<compile_context>
chip_gen: v7x
topology: tpu7x:2x2x1
jax: 0.10.0
libtpu: 0.0.40
codegen_flags: <defaults>
</compile_context>

<pallas_src>
import functools
import math

import jax
import jax.numpy as jnp
import numpy as np
from jax.experimental import pallas as pl
from jax.experimental.pallas import tpu as pltpu

N_FEAT = 256       # classifier input features
N_CLS = 3          # classifier classes
PAD_CLS = 128      # lane-dense padded class dim

_TO_GRAY_MAX_TILE_ROWS = 256    # (C, 256, 128) f32 tile  ~= 384 KiB for C=3
_RECON_MAX_TILE_ROWS = 1024     # (1024, 128) f32 tile    ~= 512 KiB / input


# ----------------------------------------------------------------------------
# Pallas kernels
# ----------------------------------------------------------------------------
def _to_gray_kernel(x_ref, o_ref, *, inv_c):
    # x_ref: (C, tile_rows, 128)   o_ref: (tile_rows, 128)
    # mean over channel slabs == (c0 + c1 + ... ) * (1/C); full-vreg VPU adds.
    s = jnp.sum(x_ref[...].astype(jnp.float32), axis=0)
    o_ref[...] = (s * inv_c).astype(o_ref.dtype)


def _classify_entropy_kernel(x_ref, w_ref, b_ref, logits_ref, ent_ref):
    # x_ref: (B, 256)  w_ref: (256, 128) zero-padded  b_ref: (1, 128)
    # logits_ref: (B, 128) lane-dense (cols >= N_CLS are zero)
    # ent_ref: (B, 1)    entropy of softmax over the first N_CLS lanes
    logits = (
        jnp.dot(x_ref[...], w_ref[...], preferred_element_type=jnp.float32)
        + b_ref[...]
    )
    logits_ref[...] = logits

    lane = jax.lax.broadcasted_iota(jnp.int32, logits.shape, 1)
    valid = lane < N_CLS
    masked = jnp.where(valid, logits, jnp.float32(-1e30))
    m = jnp.max(masked, axis=1, keepdims=True)
    e = jnp.where(valid, jnp.exp(masked - m), jnp.float32(0.0))
    denom = jnp.sum(e, axis=1, keepdims=True)
    p = e / denom                                # p == 0 on padded lanes
    # Entropy(input_) = -sum(x * log(x + 1e-7), dim=1); padded lanes add 0.
    ent_ref[...] = -jnp.sum(p * jnp.log(p + 1e-7), axis=1, keepdims=True)


def _l1_mean_kernel(a_ref, b_ref, o_ref, acc_ref, *, inv_n):
    # a_ref, b_ref: (tile_rows, 128)   o_ref: (1, 1) SMEM   acc_ref: (1, 128) VMEM
    i = pl.program_id(0)

    @pl.when(i == 0)
    def _init():
        acc_ref[...] = jnp.zeros_like(acc_ref)

    d = a_ref[...].astype(jnp.float32) - b_ref[...].astype(jnp.float32)
    acc_ref[...] += jnp.sum(jnp.abs(d), axis=0, keepdims=True)

    @pl.when(i == pl.num_programs(0) - 1)
    def _finalize():
        o_ref[0, 0] = jnp.sum(acc_ref[...]) * inv_n


# ----------------------------------------------------------------------------
# Wrappers
# ----------------------------------------------------------------------------
def to_gray_pallas(x):
    """to_gray(half=False): mean over channel dim, keepdim. x: (B, C, H, W).

    Layout: NCHW is reshaped (no transpose) to (B, C, rows, 128); the grid is
    (B, row_chunks) with the batch block squeezed, so the kernel sees a
    (C, tile_rows, 128) slab and writes a lane/sublane-dense (tile_rows, 128)
    output block.
    """
    B, C, H, W = x.shape
    hw = H * W
    rows = pl.cdiv(hw, 128)
    if rows <= _TO_GRAY_MAX_TILE_ROWS:
        tile_rows = rows
    else:
        tile_rows = _TO_GRAY_MAX_TILE_ROWS
        rows = ((rows + tile_rows - 1) // tile_rows) * tile_rows
    hw_pad = rows * 128

    xr = x.reshape(B, C, hw)
    if hw_pad != hw:
        xr = jnp.pad(xr, ((0, 0), (0, 0), (0, hw_pad - hw)))
    x4 = xr.reshape(B, C, rows, 128)

    grid = (B, rows // tile_rows)
    itemsize = jnp.dtype(x.dtype).itemsize

    out = pl.pallas_call(
        functools.partial(_to_gray_kernel, inv_c=1.0 / C),
        out_shape=jax.ShapeDtypeStruct((B, rows, 128), x.dtype),
        grid=grid,
        in_specs=[pl.BlockSpec((None, C, tile_rows, 128), lambda b, r: (b, 0, r, 0))],
        out_specs=pl.BlockSpec((None, tile_rows, 128), lambda b, r: (b, r, 0)),
        compiler_params=pltpu.CompilerParams(
            dimension_semantics=("parallel", "parallel"),
            vmem_limit_bytes=32 * 1024 * 1024,
        ),
        cost_estimate=pl.CostEstimate(
            flops=B * C * rows * 128,
            transcendentals=0,
            bytes_accessed=B * (C + 1) * rows * 128 * itemsize,
        ),
    )(x4)
    return out.reshape(B, hw_pad)[:, :hw].reshape(B, 1, H, W)


def classify_entropy_pallas(x, w_pad, b_pad):
    """Fused Linear(256,3) -> Softmax -> Entropy.  x: (B, 256).

    Returns (logits (B,3), entropy (B,)).
    """
    B = x.shape[0]
    itemsize = 4
    logits_pad, ent = pl.pallas_call(
        _classify_entropy_kernel,
        out_shape=(
            jax.ShapeDtypeStruct((B, PAD_CLS), jnp.float32),
            jax.ShapeDtypeStruct((B, 1), jnp.float32),
        ),
        cost_estimate=pl.CostEstimate(
            flops=2 * B * N_FEAT * PAD_CLS + 6 * B * PAD_CLS,
            transcendentals=2 * B * PAD_CLS,
            bytes_accessed=(B * N_FEAT + N_FEAT * PAD_CLS + PAD_CLS
                            + B * PAD_CLS + B) * itemsize,
        ),
    )(x, w_pad, b_pad)
    return logits_pad[:, :N_CLS], ent.reshape(B)


def recon_criterion_pallas(inp, target):
    """recon_criterion: mean(|input - target|) -> scalar (gridded reduction)."""
    assert inp.shape == target.shape
    n_true = int(np.prod(inp.shape))
    a = inp.reshape(-1)
    b = target.reshape(-1)

    # Pad both (with equal zeros -> |0-0| contributes nothing) to a
    # sublane/lane-dense (rows, 128) layout with rows % tile_rows == 0 so that
    # no grid step ever reads out-of-bounds data into the reduction.
    granule = 8 * 128
    n1 = ((n_true + granule - 1) // granule) * granule
    rows = n1 // 128
    if rows <= _RECON_MAX_TILE_ROWS:
        tile_rows = rows
    else:
        tile_rows = _RECON_MAX_TILE_ROWS
        rows = ((rows + tile_rows - 1) // tile_rows) * tile_rows
        n1 = rows * 128
    pad = n1 - n_true
    if pad:
        a = jnp.pad(a, (0, pad))
        b = jnp.pad(b, (0, pad))
    a2 = a.reshape(rows, 128)
    b2 = b.reshape(rows, 128)
    grid_steps = rows // tile_rows
    itemsize = jnp.dtype(inp.dtype).itemsize

    out = pl.pallas_call(
        functools.partial(_l1_mean_kernel, inv_n=1.0 / n_true),
        out_shape=jax.ShapeDtypeStruct((1, 1), jnp.float32),
        grid=(grid_steps,),
        in_specs=[
            pl.BlockSpec((tile_rows, 128), lambda i: (i, 0)),
            pl.BlockSpec((tile_rows, 128), lambda i: (i, 0)),
        ],
        out_specs=pl.BlockSpec(
            (1, 1), lambda i: (0, 0), memory_space=pltpu.MemorySpace.SMEM
        ),
        scratch_shapes=[pltpu.VMEM((1, 128), jnp.float32)],
        compiler_params=pltpu.CompilerParams(
            dimension_semantics=("arbitrary",),
            vmem_limit_bytes=32 * 1024 * 1024,
        ),
        cost_estimate=pl.CostEstimate(
            flops=3 * n1,
            transcendentals=0,
            bytes_accessed=2 * n1 * itemsize + 4,
        ),
    )(a2, b2)
    return out[0, 0]


def scale2(x):
    """Nearest-neighbor 2x upsample if H <= 128 (reshape/broadcast glue).

    Note: when both recon inputs pass through scale2, mean|scale2(a)-scale2(b)|
    == mean|a-b|, so a production pipeline could skip materializing this.
    """
    if x.shape[2] > 128:
        return x
    B, C, H, W = x.shape
    x6 = jnp.broadcast_to(x[:, :, :, None, :, None], (B, C, H, 2, W, 2))
    return x6.reshape(B, C, 2 * H, 2 * W)


# ----------------------------------------------------------------------------
# Trainer (forward-only, deterministic synthetic parameters)
# ----------------------------------------------------------------------------
class DGNetppTrainerPallas:
    def __init__(self, key):
        # classifier(): nn.Linear(256, 3), kaiming_uniform_ weight, zero bias.
        bound = math.sqrt(2.0) * math.sqrt(3.0 / N_FEAT)  # torch kaiming_uniform_, a=0
        w = jax.random.uniform(
            key, (N_FEAT, N_CLS), jnp.float32, minval=-bound, maxval=bound
        )
        self.fc_w = w
        self.fc_b = jnp.zeros((N_CLS,), jnp.float32)
        # Zero-padded to 128 output lanes -> lane-dense MXU output / stores.
        self.fc_w_pad = jnp.zeros((N_FEAT, PAD_CLS), jnp.float32).at[:, :N_CLS].set(w)
        self.fc_b_pad = jnp.zeros((1, PAD_CLS), jnp.float32)
        # hyperparameters['single'] != 'edge' path -> to_gray(False)
        self.single = to_gray_pallas

    def forward(self, x_a, x_b):
        s_in_a = self.single(x_a)  # input fed to gen_a_encode in the reference
        s_in_b = self.single(x_b)  # input fed to gen_b_encode in the reference
        x_a2 = scale2(x_a)         # input fed to id_a in the reference
        x_b2 = scale2(x_b)         # input fed to id_b in the reference
        # TODO(synk): gen_encode/gen_decode, id_a/id_b, swap_norm, MsImageDis,
        # IdDis are undefined external submodules; returning computable intermediates.
        return s_in_a, s_in_b, x_a2, x_b2

    def classify_entropy(self, feat):
        """Fused self.fc(flatten(x,1)) -> Softmax -> Entropy."""
        return classify_entropy_pallas(feat, self.fc_w_pad, self.fc_b_pad)

    def classify(self, feat):
        logits, _ = self.classify_entropy(feat)
        return logits

    def recon_criterion(self, inp, target):
        return recon_criterion_pallas(inp, jax.lax.stop_gradient(target))


# ----------------------------------------------------------------------------
# Demo / correctness check
# ----------------------------------------------------------------------------
if __name__ == "__main__":
    key = jax.random.PRNGKey(0)
    k_w, k_a, k_b, k_f = jax.random.split(key, 4)

    B, C, H, W = 2, 3, 16, 16
    x_a = jax.random.normal(k_a, (B, C, H, W), jnp.float32)
    x_b = jax.random.normal(k_b, (B, C, H, W), jnp.float32)
    feat = jax.random.normal(k_f, (B, N_FEAT), jnp.float32)

    trainer = DGNetppTrainerPallas(k_w)

    s_a, s_b, xa2, xb2 = trainer.forward(x_a, x_b)
    logits, ent = trainer.classify_entropy(feat)
    rec = trainer.recon_criterion(xa2, xb2)

    jax.block_until_ready((s_a, s_b, xa2, xb2, logits, ent, rec))

    # ---- Pure-JAX references ----
    np.testing.assert_allclose(
        np.asarray(s_a), np.asarray(jnp.mean(x_a, axis=1, keepdims=True)),
        rtol=1e-5, atol=1e-5)
    np.testing.assert_allclose(
        np.asarray(s_b), np.asarray(jnp.mean(x_b, axis=1, keepdims=True)),
        rtol=1e-5, atol=1e-5)
    assert xa2.shape == (B, C, 2 * H, 2 * W) and xb2.shape == (B, C, 2 * H, 2 * W)

    logits_ref = feat @ trainer.fc_w + trainer.fc_b
    np.testing.assert_allclose(
        np.asarray(logits), np.asarray(logits_ref), rtol=1e-3, atol=1e-3)

    # Tight check of the fused softmax+entropy math (uses the kernel's logits).
    probs_k = jax.nn.softmax(logits, axis=1)
    ent_ref = -jnp.sum(probs_k * jnp.log(probs_k + 1e-7), axis=1)
    np.testing.assert_allclose(
        np.asarray(ent), np.asarray(ent_ref), rtol=1e-5, atol=1e-5)

    rec_ref = jnp.mean(jnp.abs(xa2 - xb2))
    np.testing.assert_allclose(
        np.asarray(rec), np.asarray(rec_ref), rtol=1e-4, atol=1e-6)

    print("KERNEL_OK")
</pallas_src>

<mosaic_0001>
module attributes {stable_mosaic.version = 11 : i64} {
  func.func @_to_gray_kernel(%arg0: i32, %arg1: i32, %arg2: memref<1x3x2x128xf32, #tpu.memory_space<vmem>>, %arg3: memref<1x2x128xf32, #tpu.memory_space<vmem>>) attributes {dimension_semantics = [#tpu.dimension_semantics<parallel>, #tpu.dimension_semantics<parallel>], iteration_bounds = array<i64: 2, 1>, scalar_prefetch = 0 : i64, scratch_operands = 0 : i64, tpu.core_type = #tpu.core_type<tc>, window_params = [{transform_indices = @transform_0, window_bounds = array<i64: 1, 3, 2, 128>}, {transform_indices = @transform_1, window_bounds = array<i64: 1, 2, 128>}]} {
    %c0 = arith.constant 0 : index
    %c0_0 = arith.constant 0 : index
    %c0_1 = arith.constant 0 : index
    %c0_2 = arith.constant 0 : index
    %0 = vector.load %arg2[%c0, %c0_0, %c0_1, %c0_2] : memref<1x3x2x128xf32, #tpu.memory_space<vmem>>, vector<1x3x2x128xf32>
    %1 = vector.shape_cast %0 : vector<1x3x2x128xf32> to vector<3x2x128xf32>
    %cst = arith.constant dense<0.000000e+00> : vector<2x128xf32>
    %2 = vector.multi_reduction <add>, %1, %cst [0] : vector<3x2x128xf32> to vector<2x128xf32>
    %cst_3 = arith.constant 0.333333343 : f32
    %3 = vector.broadcast %cst_3 : f32 to vector<2x128xf32>
    %4 = arith.mulf %2, %3 : vector<2x128xf32>
    %c0_4 = arith.constant 0 : index
    %c0_5 = arith.constant 0 : index
    %c0_6 = arith.constant 0 : index
    %5 = vector.load %arg3[%c0_4, %c0_5, %c0_6] : memref<1x2x128xf32, #tpu.memory_space<vmem>>, vector<1x2x128xf32>
    %6 = vector.shape_cast %5 : vector<1x2x128xf32> to vector<2x128xf32>
    %7 = vector.shape_cast %4 : vector<2x128xf32> to vector<1x2x128xf32>
    tpu.vector_store %arg3[%c0_4, %c0_5, %c0_6], %7 {strides = array<i32>} : memref<1x2x128xf32, #tpu.memory_space<vmem>>, vector<1x2x128xf32>,
    return
  }
  func.func @transform_0(%arg0: i32, %arg1: i32) -> (i32, i32, i32, i32) {
    %c0_i32 = arith.constant 0 : i32
    %c0_i32_0 = arith.constant 0 : i32
    %c0_i32_1 = arith.constant 0 : i32
    return %arg0, %c0_i32, %arg1, %c0_i32_0 : i32, i32, i32, i32
  }
  func.func @transform_1(%arg0: i32, %arg1: i32) -> (i32, i32, i32) {
    %c0_i32 = arith.constant 0 : i32
    %c0_i32_0 = arith.constant 0 : i32
    return %arg0, %arg1, %c0_i32 : i32, i32, i32
  }
}

</mosaic_0001>

<bundles_post_ra>
// kernel: tpu_custom_call.1
= control target key start
LH: loop header
LB: loop body
LE: loop exit
PB: predicated region body
PF: predicated region fallthrough
CT: control target
= control target key end

     0   :  { %6 = vsyncpa [#allocation3], 0  ;;  %s639_s0 = inlined_call_operand.hbm [shape: f32[2,3,2,128], index: 0, kind: input, shape index: {}]   ;;  %s640_s1 = inlined_call_operand.hbm [shape: f32[2,2,128], index: 1, kind: output, shape index: {}]  }
   0x1   :  { %8 = vsyncpa [#allocation3 + $0x1], 0 }
   0x2   :  { %9 = vsyncpa [#allocation4], 0 }
   0x3   :  { %11 = vsyncpa [#allocation4 + $0x1], 0  ;;  %s465_s6 = smov 0   ;;  %s467_s7 = smov 0  }
   0x4   :  { %s469_s8 = smov 0   ;;  %s471_s9 = smov 0  }
   0x5   :  { %s473_s10 = smov 0   ;;  %s475_s11 = smov 0  }
   0x6 LB: > { %s259_s12 = sadd.s32 4294967295, %s449_s11   ;;  %s260_s13 = sadd.s32 4294967294, %s449_s11   ;;  %s449_s11 = sphi %s475_s11, %s17_s11   ;;  %s445_s10 = sphi %s473_s10, %s655_s10   ;;  %s441_s9 = sphi %s471_s9, %s654_s9   ;;  %s437_s8 = sphi %s469_s8, %s653_s8   ;;  %s433_s7 = sphi %s467_s7, %s652_s7   ;;  %s429_s6 = sphi %s465_s6, %s651_s6  }
   0x7   : > { %s29_s14 = sadd.s32 1, %s445_s10  ;;  %s38_s15 = sadd.s32 1, %s437_s8 }
   0x8   : > { %p31_p0 = scmp.ge.s32.totalorder %s29_s14, 2  ;;  %p45_p1 = scmp.ne.s32.totalorder %s437_s8, %s433_s7 }
   0x9   : > { %p46_p2 = scmp.eq.s32.totalorder %s449_s11, 0  ;;  %p51_p3 = scmp.ne.s32.totalorder %s433_s7, %s429_s6 }
   0xa   : > { %s657_s14 = smov (%p31_p0, %s29_s14), 0  ;;  %p52_p5 = scmp.eq.s32.totalorder %s259_s12, 0 }
   0xb   : > { %p506_p4 = por %p46_p2, %p45_p1  ;;  %s33_s17 = ssub.s32 %s445_s10, %s657_s14 }
   0xc   : > { %p77_p6 = scmp.eq.s32.totalorder %s259_s12, 1  ;;  %p36_p7 = scmp.eq.s32.totalorder %s33_s17, 0 }
   0xd   : > { %p512_p8 = por %p52_p5, %p51_p3  ;;  %p83_p10 = scmp.eq.s32.totalorder %s260_s13, 1 }
   0xe   : > { %p516_p9 = por %p77_p6, %p45_p1  ;;  %p285_p13 = scmp.lt.s32.totalorder %s449_s11, 2 }
   0xf   : > { %s521_s20 = scalar_select %p36_p7, %s437_s8, %s38_s15  }
  0x10   : > { %s644_s19 = scalar_select %p516_p9, 1, 0 }
  0x11   : > { %p523_p11 = por %p83_p10, %p51_p3  ;;  %s103_s22 = sand.u32 1, %s437_s8  }
  0x12   : > { %s270_s23 = smul.u32 6, %s103_s22  ;;  %p533_p0 = pnand %p285_p13, %p506_p4 }
  0x13   : > { %s645_s21 = scalar_select %p523_p11, 1, 0 }
  0x14   : > { %s271_s24 = smul.u32 96, %s445_s10  ;;  %s107_s29 = scalar_lea.vmem [#allocation2], %s270_s23 }
  0x15   : > { %s115_s30 = sshll.u32 %s107_s29, 4  ;;  %s545_s2 = scalar_lea.sflag [#allocation3], %s103_s22  ;;  %s542_s30 = int_to_ptr.vmem [resolvable:$true] %s115_s30 }
  0x16   : > { %s540_s28 = scalar_lea.hbm %s639_s0, %s271_s24  ;;  %p339_p3 = pneg %p533_p0 }
  0x17   : > { %s337_s3 = scalar_lea.hbm %s540_s28, 96  ;;  %s342_s12 = scalar_lea.hbm %s639_s0, 192 }
  0x18   : > { %p338_p2 = scmp.ne.s32.totalorder %s540_s28, %s337_s3  ;;  %p343_p6 = scmp.lt.u32.totalorder %s540_s28, %s639_s0 }
  0x19   : > { %p344_p7 = scmp.lt.u32.totalorder %s342_s12, %s337_s3  ;;  %p346_p13 = scmp.lt.u32.totalorder %s337_s3, %s540_s28 }
  0x1a   : > { %p340_p4 = pnand %p339_p3, %p338_p2 }
  0x1b   : > { %p345_p10 = por %p344_p7, %p343_p6 }
  0x1c   : > { %p341_p5 = pneg %p340_p4 }
  0x1d   : > { %p347_p12 = por %p346_p13, %p345_p10 }
  0x1f   : > { %p348_p1 = pnand %p347_p12, %p341_p5 }
  0x21   : > { %351 = shalt.err (!%p348_p1)
}
  0x22   : > { %s352_s16 = scalar_lea.vmem %s542_s30, 96  ;;  %s451_s17 = smov [#allocation2]  }
  0x23   : > { %p353_p2 = scmp.ne.s32.totalorder %s542_s30, %s352_s16  ;;  %s357_s22 = sshll.u32 %s451_s17, 4  ;;  %s358_s22 = int_to_ptr.vmem [resolvable:$false] %s357_s22 }
  0x24   : > { %s359_s23 = scalar_lea.vmem %s358_s22, 192  ;;  %p360_p9 = scmp.lt.s32.totalorder %s542_s30, %s358_s22 }
  0x25   : > { %p355_p4 = pnand %p353_p2, %p339_p3  ;;  %p361_p6 = scmp.lt.s32.totalorder %s359_s23, %s352_s16 }
  0x27   : > { %p356_p11 = pneg %p355_p4  ;;  %p362_p7 = por %p361_p6, %p360_p9 }
  0x29   : > { %p363_p10 = pnand %p362_p7, %p356_p11 }
  0x2b   : > { %366 = shalt.err (!%p363_p10)
}
  0x2c   : > { %s452_s24 = smov 32   ;;  %s453_s26 = smov 2  }
  0x2d   : > { %280 = dma.hbm_to_vmem [thread:$0]  (!%p533_p0), %s540_s28, 96, %s542_s30, %s545_s2, %s452_s24, %s452_s24, %s453_s26  }
  0x2e   : > { %p123_p12 = scmp.lt.s32.totalorder %s449_s11, 3  ;;  %p647_p1 = scmp.ge.s32.totalorder %s449_s11, 1 }
  0x30   : > { %p124_p3 = pnand %p647_p1, %p123_p12 }
  0x31   : > { %s577_s27 = sand.u32 (!%p124_p3), 1, %s433_s7  }
  0x32   : > { %127 = sbr.rel (%p124_p3) target bundleno = 84 (0x54), region = 24  ;;  %s130_s3 = scalar_lea.sflag (!%p124_p3), [#allocation3], %s577_s27 }
  0x33   : > { %s272_s29 = smul.u32 (!%p124_p3), 6, %s577_s27 }
  0x35   : > { %s133_s4 = scalar_lea.vmem (!%p124_p3), [#allocation2], %s272_s29 }
  0x39   : > { %420 = dma.done.wait (%p512_p8), %s130_s3, 96  }
  0x3a   : > { %422 = vsyncadd (%p512_p8), %s130_s3, 4294967200  ;;  %s265_s25 = sshll.u32 %s577_s27, 1  ;;  %vm155_vm0 = vcmask 1041408   ;;  %v152_v0 = vld [vmem:[%s133_s4] sm:$0x3]  ;;  %s267_s2 = sshll.u32 %s441_s9, 5 }
  0x3b   : > { %v153_v1 = vld [vmem:[%s133_s4 + $0x2] sm:$0x3]  ;;  %v154_v2 = vld [vmem:[%s133_s4 + $0x4] sm:$0x3]  ;;  %v156_v3 = vsel %vm155_vm0, %v152_v0, 0.0  ;;  %s151_s28 = scalar_lea.vmem [#allocation5], %s265_s25  ;;  %s592_s12 = scalar_lea.hbm %s640_s1, %s267_s2 }
  0x3c   : > { %v157_v4 = vsel %vm155_vm0, %v153_v1, 0.0  ;;  %v159_v5 = vsel %vm155_vm0, %v154_v2, 0.0  ;;  %s178_s30 = sshll.u32 %s151_s28, 4  ;;  %s164_s13 = scalar_lea.sflag [#allocation4], %s577_s27  ;;  %s587_s30 = int_to_ptr.vmem [resolvable:$true] %s178_s30 }
  0x3d   : > { %v158_v6 = vadd.f32 %v157_v4, %v156_v3  ;;  %s367_s15 = scalar_lea.vmem %s587_s30, 32  ;;  %p648_p9 = scmp.ne.s32.totalorder %s644_s19, 0 }
  0x3e   : > { %p368_p8 = scmp.ne.s32.totalorder %s587_s30, %s367_s15  ;;  %s454_s9 = smov [#allocation5]  }
  0x3f   : > { %v160_v7 = vadd.f32 %v159_v5, %v158_v6  ;;  %s371_s16 = sshll.u32 %s454_s9, 4  ;;  %s372_s16 = int_to_ptr.vmem [resolvable:$false] %s371_s16 }
  0x40   : > { %p369_p11 = pnand %p368_p8, %p648_p9  ;;  %s373_s17 = scalar_lea.vmem %s372_s16, 64 }
  0x41   : > { %v161_v8 = vmul.f32 0.33333334, %v160_v7  ;;  %p374_p5 = scmp.lt.s32.totalorder %s587_s30, %s372_s16  ;;  %p375_p13 = scmp.lt.s32.totalorder %s373_s17, %s367_s15 }
  0x42   : > { %p370_p0 = pneg %p369_p11 }
  0x43   : > { %162 = vst [vmem:[%s151_s28] sm:$0x3] %v161_v8  ;;  %p376_p2 = por %p375_p13, %p374_p5 }
  0x45   : > { %p377_p4 = pnand %p376_p2, %p370_p0 }
  0x47   : > { %380 = shalt.err (!%p377_p4)
}
  0x48   : > { %s381_s22 = scalar_lea.hbm %s592_s12, 32  ;;  %s385_s26 = scalar_lea.hbm %s640_s1, 64 }
  0x49   : > { %p382_p6 = scmp.ne.s32.totalorder %s592_s12, %s381_s22  ;;  %p386_p12 = scmp.lt.u32.totalorder %s592_s12, %s640_s1 }
  0x4a   : > { %p387_p1 = scmp.lt.u32.totalorder %s385_s26, %s381_s22  ;;  %p389_p8 = scmp.lt.u32.totalorder %s381_s22, %s592_s12 }
  0x4b   : > { %p383_p7 = pnand %p382_p6, %p648_p9 }
  0x4c   : > { %p388_p3 = por %p387_p1, %p386_p12 }
  0x4d   : > { %p384_p10 = pneg %p383_p7 }
  0x4e   : > { %p390_p11 = por %p389_p8, %p388_p3 }
  0x50   : > { %p391_p0 = pnand %p390_p11, %p384_p10 }
  0x52   : > { %394 = shalt.err (!%p391_p0)
}
  0x53   : > { %275 = dma.vmem_to_hbm [thread:$0]  (%p648_p9), %s587_s30, 32, %s592_s12, %s164_s13  }
  0x54 PF: > { %s190_s3 = sand.u32 1, %s429_s6   ;;  %p649_p5 = scmp.ne.s32.totalorder %s645_s21, 0 }
  0x55   : > { %p650_p13 = scmp.ge.s32.totalorder %s449_s11, 2  ;;  %s191_s4 = scalar_lea.sflag [#allocation4], %s190_s3 }
  0x57   : > { %p282_p2 = pnand %p650_p13, %p649_p5 }
  0x59   : > { %424 = dma.done.wait (!%p282_p2), %s191_s4, 32  }
  0x5a   : > { %426 = vsyncadd (!%p282_p2), %s191_s4, 4294967264  ;;  %s17_s11 = sadd.s32 1, %s449_s11   ;;  %s651_s6 = smov %s433_s7 }
  0x5b   : > { %p14_p4 = scmp.ge.s32.totalorder %s17_s11, 4   ;;  %s652_s7 = smov %s437_s8 }
  0x5c   : > { %s653_s8 = smov %s521_s20  ;;  %s654_s9 = smov %s445_s10 }
  0x5d   : > { %s655_s10 = smov %s657_s14  ;;  %16 = sbr.rel (!%p14_p4) target bundleno = 6 (0x6), region = 69 }
  0x64   :  { %196 = vsyncpa [#allocation3], 1 }
  0x65   :  { %198 = vsyncpa [#allocation3 + $0x1], 1 }
  0x66   :  { %199 = vsyncpa [#allocation4], 1 }
  0x67   :  { %201 = vsyncpa [#allocation4 + $0x1], 1 }

</bundles_post_ra>
